<compile_context>
chip_gen: v6e
topology: v6e:2x2x1
jax: 0.10.0
libtpu: 0.0.40
codegen_flags: <defaults>
</compile_context>

<pallas_src>
import jax
import jax.numpy as jnp
import numpy as np
from jax.experimental import pallas as pl
from jax.experimental.pallas import tpu as pltpu


# ----------------------------- model constants -----------------------------
K = 20                    # conv kernel size
C1 = 9                    # conv1 out channels
C2 = 24                   # conv2 out channels
L = 55                    # input length implied by view(64,-1) / fc1(24,10)
L1 = L + 2 - K + 1        # 38 : conv1 output length (padding=1)
P1L = L1 // 2             # 19 : conv1 length after maxpool(2)
L2 = P1L + 2 - K + 1      # 2  : conv2 output length
NC1 = C1 * P1L            # 171: pooled conv1 features per example
B = 64                    # batch forced by x.view(64, -1)

# packed-slab geometry (128-lane aligned column groups, 8-aligned bias rows)
W1_COLS = 512             # conv1: phase0 @ lane 0, phase1 @ lane 256
W1_ROWS = 64              # rows 0..54 = taps, row 56 = bias, rest zero
W1_BIAS_ROW = 56
P1_W = W1_COLS // 2       # 256: lane width of the pooled conv1 activation

W2_COLS = 256             # conv2: t=0 @ lane 0, t=1 @ lane 128
W2_ROWS = 264             # rows 0..170 = taps, row 256 = bias, rest zero
W2_BIAS_ROW = 256
H_W = W2_COLS // 2        # 128: lane width of the pooled conv2 activation

WF_ROWS = 136             # rows 0..23 = fc weight, row 128 = bias, rest zero
WF_BIAS_ROW = 128


# ---------------------------------------------------------------------------
# Single fused kernel: conv1+bias+ReLU+pool + conv2+bias+ReLU+pool + fc1+bias
#   x_ref  : (64, 55)    raw (unpadded) input rows
#   w1_ref : (64, 512)   Toeplitz conv1 slab (padding=1 folded in), bias row 56
#   w2_ref : (264, 256)  conv2 slab (both output positions), bias row 256
#   wf_ref : (136, 10)   fc1 weight (rows 0..23) + bias row 128
#   o_ref  : (64, 10)
# ---------------------------------------------------------------------------
def fused_cnn_kernel(x_ref, w1_ref, w2_ref, wf_ref, o_ref):
    # conv1: one MXU matmul produces BOTH pooling phases; bias comes from the
    # slab's bias row (one broadcast VPU add); unused lanes stay exactly 0.
    y = jnp.dot(x_ref[...], w1_ref[:L, :], preferred_element_type=jnp.float32)
    y = jnp.maximum(y + w1_ref[W1_BIAS_ROW:W1_BIAS_ROW + 1, :], 0.0)
    # maxpool(2): 128-lane-aligned halves -> plain per-vreg max, no relayout.
    p1 = jnp.maximum(y[:, :P1_W], y[:, P1_W:])                       # (64, 256)

    # conv2: one matmul for both output positions; pool = aligned lane max;
    # ReLU after the max is valid by monotonicity (bias identical per phase).
    u = jnp.dot(p1, w2_ref[:P1_W, :], preferred_element_type=jnp.float32)
    u = u + w2_ref[W2_BIAS_ROW:W2_BIAS_ROW + 1, :]
    h = jnp.maximum(jnp.maximum(u[:, :H_W], u[:, H_W:]), 0.0)        # (64, 128)

    # fc1 (contraction over 128 lanes; rows 24..127 of wf slab are zero)
    o_ref[...] = (jnp.dot(h, wf_ref[:WF_BIAS_ROW, :],
                          preferred_element_type=jnp.float32)
                  + wf_ref[WF_BIAS_ROW:WF_BIAS_ROW + 1, :])


# ---------------------------------------------------------------------------
# One-shot parameter packing (per weight update, NOT per forward call).
# Deliberately plain numpy so it can never fuse into the hot jitted forward.
# ---------------------------------------------------------------------------
def pack_params(w1, b1, w2, b2, wf, bf):
    w1 = np.asarray(w1, np.float32); b1 = np.asarray(b1, np.float32)
    w2 = np.asarray(w2, np.float32); b2 = np.asarray(b2, np.float32)
    wf = np.asarray(wf, np.float32); bf = np.asarray(bf, np.float32)

    # conv1 Toeplitz slab: column = phase*256 + c*19 + j  <->  output t=2j+phase
    # of channel c; row m is the raw input index (padding=1 folded: tap = m+1-t)
    w1s = np.zeros((W1_ROWS, W1_COLS), np.float32)
    for phase in range(2):
        for c in range(C1):
            for j in range(P1L):
                col = phase * P1_W + c * P1L + j
                t = 2 * j + phase
                for tap in range(K):
                    m = t + tap - 1
                    if 0 <= m < L:
                        w1s[m, col] = w1[c, 0, tap]
                w1s[W1_BIAS_ROW, col] = b1[c]

    # conv2 slab: rows ordered like p1 lanes (ic*19 + j); columns t*128 + oc.
    # padding=1 -> t=0 uses taps 1..19, t=1 uses taps 0..18.
    w2s = np.zeros((W2_ROWS, W2_COLS), np.float32)
    for t in range(L2):
        base = t * H_W
        for oc in range(C2):
            for ic in range(C1):
                for j in range(P1L):
                    tap = (j + 1) - t
                    if 0 <= tap < K:
                        w2s[ic * P1L + j, base + oc] = w2[oc, ic, tap]
            w2s[W2_BIAS_ROW, base + oc] = b2[oc]

    # fc1 slab
    wfs = np.zeros((WF_ROWS, 10), np.float32)
    wfs[:C2, :] = wf.T
    wfs[WF_BIAS_ROW, :] = bf

    return jnp.asarray(w1s), jnp.asarray(w2s), jnp.asarray(wfs)


@jax.jit
def simple_cnn_forward(x, w1s, w2s, wfs):
    """Hot path: takes pre-packed weight slabs, launches one Pallas call."""
    assert x.shape == (B, 1, L), "forward hard-codes x.view(64,-1) with fc1(24,10)"
    x2d = x[:, 0, :]                                              # (64, 55)
    return pl.pallas_call(
        fused_cnn_kernel,
        out_shape=jax.ShapeDtypeStruct((B, 10), jnp.float32),
        # whole arrays resident in VMEM, no grid, no pipeline wrapper
        in_specs=[pl.BlockSpec(memory_space=pltpu.MemorySpace.VMEM)] * 4,
        out_specs=pl.BlockSpec(memory_space=pltpu.MemorySpace.VMEM),
        cost_estimate=pl.CostEstimate(flops=12_200_000, transcendentals=0,
                                      bytes_accessed=424_000),
    )(x2d, w1s, w2s, wfs)


def reference_forward(x, w1, b1, w2, b2, wf, bf):
    """Independent plain-JAX re-implementation of the PyTorch forward."""
    dn = ("NCH", "OIH", "NCH")
    hi = jax.lax.Precision.HIGHEST
    y = jax.lax.conv_general_dilated(x, w1, (1,), [(1, 1)],
                                     dimension_numbers=dn, precision=hi)
    y = jax.nn.relu(y + b1[None, :, None])
    y = jax.lax.reduce_window(y, -jnp.inf, jax.lax.max, (1, 1, 2), (1, 1, 2), "VALID")
    y = jax.lax.conv_general_dilated(y, w2, (1,), [(1, 1)],
                                     dimension_numbers=dn, precision=hi)
    y = jax.nn.relu(y + b2[None, :, None])
    y = jax.lax.reduce_window(y, -jnp.inf, jax.lax.max, (1, 1, 2), (1, 1, 2), "VALID")
    y = y.reshape(64, -1)
    return jnp.dot(y, wf.T, precision=hi) + bf


if __name__ == "__main__":
    key = jax.random.PRNGKey(0)
    k1, k2, k3, k4, k5, k6, kx = jax.random.split(key, 7)

    # deterministic synthetic parameters (same shapes as the nn.Module)
    w1 = jax.random.normal(k1, (9, 1, 20), jnp.float32) * 0.1    # conv1.weight
    b1 = jax.random.normal(k2, (9,), jnp.float32) * 0.1          # conv1.bias
    w2 = jax.random.normal(k3, (24, 9, 20), jnp.float32) * 0.1   # conv2.weight
    b2 = jax.random.normal(k4, (24,), jnp.float32) * 0.1         # conv2.bias
    wf = jax.random.normal(k5, (10, 24), jnp.float32) * 0.1      # fc1.weight
    bf = jax.random.normal(k6, (10,), jnp.float32) * 0.1         # fc1.bias

    # batch=64 is forced by x.view(64, -1); L=55 makes the flatten -> 24 features
    x = jax.random.normal(kx, (64, 1, 55), jnp.float32)

    # one-shot weight packing (off the per-forward hot path)
    w1s, w2s, wfs = pack_params(w1, b1, w2, b2, wf, bf)

    out = simple_cnn_forward(x, w1s, w2s, wfs)
    out = jax.block_until_ready(out)

    ref = reference_forward(x, w1, b1, w2, b2, wf, bf)
    assert out.shape == (64, 10)
    assert np.allclose(np.asarray(out), np.asarray(ref), atol=2e-4, rtol=2e-4)

    print("KERNEL_OK")
</pallas_src>

<mosaic_0001>
module attributes {stable_mosaic.version = 11 : i64} {
  func.func @fused_cnn_kernel(%arg0: memref<64x55xf32, #tpu.memory_space<vmem>>, %arg1: memref<64x512xf32, #tpu.memory_space<vmem>>, %arg2: memref<264x256xf32, #tpu.memory_space<vmem>>, %arg3: memref<136x10xf32, #tpu.memory_space<vmem>>, %arg4: memref<64x10xf32, #tpu.memory_space<vmem>>) attributes {dimension_semantics = [], scalar_prefetch = 0 : i64, scratch_operands = 0 : i64, tpu.core_type = #tpu.core_type<tc>} {
    %c0 = arith.constant 0 : index
    %c0_0 = arith.constant 0 : index
    %0 = vector.load %arg0[%c0, %c0_0] : memref<64x55xf32, #tpu.memory_space<vmem>>, vector<64x55xf32>
    %c0_1 = arith.constant 0 : index
    %c0_2 = arith.constant 0 : index
    %1 = vector.load %arg1[%c0_1, %c0_2] : memref<64x512xf32, #tpu.memory_space<vmem>>, vector<55x512xf32>
    %cst = arith.constant dense<0.000000e+00> : vector<64x512xf32>
    %2 = tpu.matmul %0, %1, %cst {dimension_numbers = #tpu.dot_dimension_numbers<[1], [0], [0], [1], [0, 0, 1, 1], [], []>} : vector<64x55xf32>, vector<55x512xf32>, vector<64x512xf32> -> vector<64x512xf32>
    %c56 = arith.constant 56 : index
    %c0_3 = arith.constant 0 : index
    %3 = vector.load %arg1[%c56, %c0_3] : memref<64x512xf32, #tpu.memory_space<vmem>>, vector<1x512xf32>
    %4 = vector.broadcast %3 : vector<1x512xf32> to vector<64x512xf32>
    %5 = arith.addf %2, %4 : vector<64x512xf32>
    %cst_4 = arith.constant 0.000000e+00 : f32
    %6 = vector.broadcast %cst_4 : f32 to vector<64x512xf32>
    %7 = arith.maximumf %5, %6 : vector<64x512xf32>
    %8 = vector.extract_strided_slice %7 {offsets = [0, 0], sizes = [64, 256], strides = [1, 1]} : vector<64x512xf32> to vector<64x256xf32>
    %9 = vector.extract_strided_slice %7 {offsets = [0, 256], sizes = [64, 256], strides = [1, 1]} : vector<64x512xf32> to vector<64x256xf32>
    %10 = arith.maximumf %8, %9 : vector<64x256xf32>
    %c0_5 = arith.constant 0 : index
    %c0_6 = arith.constant 0 : index
    %11 = vector.load %arg2[%c0_5, %c0_6] : memref<264x256xf32, #tpu.memory_space<vmem>>, vector<256x256xf32>
    %cst_7 = arith.constant dense<0.000000e+00> : vector<64x256xf32>
    %12 = tpu.matmul %10, %11, %cst_7 {dimension_numbers = #tpu.dot_dimension_numbers<[1], [0], [0], [1], [0, 0, 1, 1], [], []>} : vector<64x256xf32>, vector<256x256xf32>, vector<64x256xf32> -> vector<64x256xf32>
    %c256 = arith.constant 256 : index
    %c0_8 = arith.constant 0 : index
    %13 = vector.load %arg2[%c256, %c0_8] : memref<264x256xf32, #tpu.memory_space<vmem>>, vector<1x256xf32>
    %14 = vector.broadcast %13 : vector<1x256xf32> to vector<64x256xf32>
    %15 = arith.addf %12, %14 : vector<64x256xf32>
    %16 = vector.extract_strided_slice %15 {offsets = [0, 0], sizes = [64, 128], strides = [1, 1]} : vector<64x256xf32> to vector<64x128xf32>
    %17 = vector.extract_strided_slice %15 {offsets = [0, 128], sizes = [64, 128], strides = [1, 1]} : vector<64x256xf32> to vector<64x128xf32>
    %18 = arith.maximumf %16, %17 : vector<64x128xf32>
    %cst_9 = arith.constant 0.000000e+00 : f32
    %19 = vector.broadcast %cst_9 : f32 to vector<64x128xf32>
    %20 = arith.maximumf %18, %19 : vector<64x128xf32>
    %c0_10 = arith.constant 0 : index
    %c0_11 = arith.constant 0 : index
    %21 = vector.load %arg3[%c0_10, %c0_11] : memref<136x10xf32, #tpu.memory_space<vmem>>, vector<128x10xf32>
    %cst_12 = arith.constant dense<0.000000e+00> : vector<64x10xf32>
    %22 = tpu.matmul %20, %21, %cst_12 {dimension_numbers = #tpu.dot_dimension_numbers<[1], [0], [0], [1], [0, 0, 1, 1], [], []>} : vector<64x128xf32>, vector<128x10xf32>, vector<64x10xf32> -> vector<64x10xf32>
    %c128 = arith.constant 128 : index
    %c0_13 = arith.constant 0 : index
    %23 = vector.load %arg3[%c128, %c0_13] : memref<136x10xf32, #tpu.memory_space<vmem>>, vector<1x10xf32>
    %24 = vector.broadcast %23 : vector<1x10xf32> to vector<64x10xf32>
    %25 = arith.addf %22, %24 : vector<64x10xf32>
    %c0_14 = arith.constant 0 : index
    %c0_15 = arith.constant 0 : index
    %26 = vector.load %arg4[%c0_14, %c0_15] : memref<64x10xf32, #tpu.memory_space<vmem>>, vector<64x10xf32>
    tpu.vector_store %arg4[%c0_14, %c0_15], %25 {strides = array<i32>} : memref<64x10xf32, #tpu.memory_space<vmem>>, vector<64x10xf32>,
    return
  }
}

</mosaic_0001>

<bundles_post_ra>
// kernel: simple_cnn_forward.1
= control target key start
LH: loop header
LB: loop body
LE: loop exit
PB: predicated region body
PF: predicated region fallthrough
CT: control target
= control target key end

     0   :  { %9 = vsyncpa [#allocation3], 0  ;;  %s864_s15 = smov [#allocation2]   ;;  %s1216_s0 = inlined_call_operand.vmem [shape: f32[64,55], index: 0, kind: input, shape index: {}]   ;;  %s1217_s1 = inlined_call_operand.vmem [shape: f32[64,512], index: 1, kind: input, shape index: {}]   ;;  %s1218_s2 = inlined_call_operand.hbm [shape: f32[264,256], index: 2, kind: input, shape index: {}]   ;;  %s1219_s3 = inlined_call_operand.vmem [shape: f32[136,10], index: 3, kind: input, shape index: {}]   ;;  %s1220_s4 = inlined_call_operand.vmem [shape: f32[64,10], index: 4, kind: output, shape index: {}]  }
   0x1   :  { %s19_s16 = sshll.u32 %s864_s15, 4  ;;  %s20_s16 = int_to_ptr.vmem [resolvable:$true] %s19_s16 }
   0x2   :  { %s850_s17 = scalar_lea.vmem %s20_s16, 8448  ;;  %p855_p1 = scmp.lt.s32.totalorder %s20_s16, %s20_s16 }
   0x3   :  { %p851_p0 = scmp.ne.s32.totalorder %s20_s16, %s850_s17  ;;  %p856_p2 = scmp.lt.s32.totalorder %s850_s17, %s850_s17 }
   0x5   :  { %p857_p3 = por %p856_p2, %p855_p1 }
   0x7   :  { %p858_p4 = pnand %p857_p3, %p851_p0 }
   0x9   :  { %861 = shalt.err (!%p858_p4)
}
   0xa   :  { %s865_s18 = smov 256   ;;  %s866_s19 = smov 16  }
   0xb   :  { %25 = dma.hbm_to_vmem [thread:$0]  %s1218_s2, 8448, %s20_s16, [#allocation3], %s865_s18, %s865_s18, %s866_s19  }
   0xc   :  { %862 = dma.done.wait [#allocation3], 8448  }
   0xd   :  { %863 = vsyncadd [#allocation3], 4294958848  ;;  %v867_v0 = vmov 0.0   ;;  %vm115_vm0 = vcmask 1046528   ;;  %v64_v1 = vld [vmem:[%s1217_s1 + $0xc8] sm:$0x7f] }
   0xe   :  { %192 = vmatprep.mubr.f32.mxu1 %v867_v0  ;;  %v63_v2 = vld [vmem:[%s1217_s1 + $0xc0] sm:$0x7f]  ;;  %v60_v3 = vld [vmem:[%s1217_s1 + $0xa8] sm:$0xff]  ;;  %749 = vmatprep.subr.msk.mxu1 %vm115_vm0, %v64_v1  ;;  %vm90_vm1 = vcmask 449536   ;;  %v66_v16 = vld [vmem:[%s1217_s1 + $0xd8] sm:$0x7f] }
   0xf   :  { %v59_v4 = vld [vmem:[%s1217_s1 + $0xa0] sm:$0xff]  ;;  %750 = vmatpush1.msk.msra.mxu1 %vm115_vm0, %v63_v2  ;;  %v56_v5 = vld [vmem:[%s1217_s1 + $0x88] sm:$0xff]  ;;  %v433_v17 = vld [vmem:[#allocation2 + $0xf8] sm:$0xff]  ;;  %vm734_vm2 = vcmask 80896  }
  0x10   :  { %148 = vmatprep.subr.mxu1 %v60_v3  ;;  %v55_v6 = vld [vmem:[%s1217_s1 + $0x80] sm:$0xff]  ;;  %v52_v7 = vld [vmem:[%s1217_s1 + $0x68] sm:$0xff]  ;;  %v432_v18 = vld [vmem:[#allocation2 + $0xf0] sm:$0xff]  ;;  %479 = vmatprep.subr.mxu0 %v433_v17 }
  0x11   :  { %149 = vmatpush1.msra.mxu1 %v59_v4  ;;  %v51_v8 = vld [vmem:[%s1217_s1 + $0x60] sm:$0xff]  ;;  %v48_v9 = vld [vmem:[%s1217_s1 + $0x48] sm:$0xff]  ;;  %v65_v19 = vld [vmem:[%s1217_s1 + $0xd0] sm:$0x7f]  ;;  %480 = vmatpush1.msra.mxu0 %v432_v18 }
  0x12   :  { %150 = vmatprep.subr.mxu1 %v56_v5  ;;  %v47_v10 = vld [vmem:[%s1217_s1 + $0x40] sm:$0xff]  ;;  %v44_v11 = vld [vmem:[%s1217_s1 + $0x28] sm:$0xff]  ;;  %v62_v20 = vld [vmem:[%s1217_s1 + $0xb8] sm:$0xff] }
  0x13   :  { %151 = vmatpush1.msra.mxu1 %v55_v6  ;;  %v43_v12 = vld [vmem:[%s1217_s1 + $0x20] sm:$0xff]  ;;  %v40_v13 = vld [vmem:[%s1217_s1 + $0x8] sm:$0xff]  ;;  %v61_v22 = vld [vmem:[%s1217_s1 + $0xb0] sm:$0xff] }
  0x14   :  { %152 = vmatprep.subr.mxu1 %v52_v7  ;;  %v39_v14 = vld [vmem:[%s1217_s1] sm:$0xff]  ;;  %v431_v21 = vld [vmem:[#allocation2 + $0xe8] sm:$0xff]  ;;  %v58_v25 = vld [vmem:[%s1217_s1 + $0x98] sm:$0xff] }
  0x15   :  { %153 = vmatpush1.msra.mxu1 %v51_v8  ;;  %v944_v15 = vld [vmem:[%s1216_s0] sm:$0xff]  ;;  %v966_v24 = vld [vmem:[%s1216_s0 + $0x8] sm:$0xff]  ;;  %v57_v26 = vld [vmem:[%s1217_s1 + $0x90] sm:$0xff]  ;;  %481 = vmatprep.subr.mxu0 %v431_v21 }
  0x16   :  { %154 = vmatprep.subr.mxu1 %v48_v9  ;;  %v430_v23 = vld [vmem:[#allocation2 + $0xe0] sm:$0xff]  ;;  %v54_v27 = vld [vmem:[%s1217_s1 + $0x78] sm:$0xff]  ;;  %v53_v29 = vld [vmem:[%s1217_s1 + $0x70] sm:$0xff] }
  0x17   :  { %155 = vmatpush1.msra.mxu1 %v47_v10  ;;  %482 = vmatpush1.msra.mxu0 %v430_v23  ;;  %v429_v28 = vld [vmem:[#allocation2 + $0xd8] sm:$0xff]  ;;  %v428_v30 = vld [vmem:[#allocation2 + $0xd0] sm:$0xff]  ;;  %v427_v35 = vld [vmem:[#allocation2 + $0xc8] sm:$0xff] }
  0x18   :  { %156 = vmatprep.subr.mxu1 %v44_v11  ;;  %v986_v31 = vld [vmem:[%s1216_s0 + $0x10] sm:$0xff]  ;;  %v50_v32 = vld [vmem:[%s1217_s1 + $0x58] sm:$0xff]  ;;  %483 = vmatprep.subr.mxu0 %v429_v28  ;;  %v426_v37 = vld [vmem:[#allocation2 + $0xc0] sm:$0xff] }
  0x19   :  { %157 = vmatpush1.msra.mxu1 %v43_v12  ;;  %v49_v33 = vld [vmem:[%s1217_s1 + $0x50] sm:$0xff]  ;;  %v46_v34 = vld [vmem:[%s1217_s1 + $0x38] sm:$0xff]  ;;  %484 = vmatpush1.msra.mxu0 %v428_v30  ;;  %v35_v43 = vld [vmem:[%s1216_s0 + $0x20] sm:$0xff] }
  0x1a   :  { %158 = vmatprep.subr.mxu1 %v40_v13  ;;  %v45_v36 = vld [vmem:[%s1217_s1 + $0x30] sm:$0xff]  ;;  %v34_v38 = vld [vmem:[%s1216_s0 + $0x18] sm:$0xff]  ;;  %485 = vmatprep.subr.mxu0 %v427_v35  ;;  %v423_v44 = vld [vmem:[#allocation2 + $0xa8] sm:$0xff] }
  0x1b   :  { %159 = vmatpush1.msra.mxu1 %v39_v14  ;;  %v42_v39 = vld [vmem:[%s1217_s1 + $0x18] sm:$0xff]  ;;  %v41_v40 = vld [vmem:[%s1217_s1 + $0x10] sm:$0xff]  ;;  %486 = vmatpush1.msra.mxu0 %v426_v37  ;;  %v422_v45 = vld [vmem:[#allocation2 + $0xa0] sm:$0xff] }
  0x1c   :  { %751 = vmatmul.mubr.msk.f32.vlgmr.msra.gmra.mxu1 %vm90_vm1, %v944_v15  ;;  %759 = vmatprep.subr.msk.mxu1 %vm115_vm0, %v66_v16  ;;  %v425_v41 = vld [vmem:[#allocation2 + $0xb8] sm:$0xff]  ;;  %v424_v42 = vld [vmem:[#allocation2 + $0xb0] sm:$0xff]  ;;  %v36_v48 = vld [vmem:[%s1216_s0 + $0x28] sm:$0xff] }
  0x1d   :  { %760 = vmatpush1.msk.msra.mxu1 %vm115_vm0, %v65_v19  ;;  %198 = vmatprep.mubr.f32.mxu1 %v867_v0  ;;  %v421_v46 = vld [vmem:[#allocation2 + $0x98] sm:$0xff]  ;;  %v420_v47 = vld [vmem:[#allocation2 + $0x90] sm:$0xff]  ;;  %v419_v49 = vld [vmem:[#allocation2 + $0x88] sm:$0xff] }
  0x1e   :  { %261 = vmatprep.subr.mxu1 %v62_v20  ;;  %487 = vmatprep.subr.mxu0 %v425_v41  ;;  %v418_v50 = vld [vmem:[#allocation2 + $0x80] sm:$0xff]  ;;  %v417_v51 = vld [vmem:[#allocation2 + $0x78] sm:$0xff]  ;;  %v416_v52 = vld [vmem:[#allocation2 + $0x70] sm:$0xff] }
  0x1f   :  { %262 = vmatpush1.msra.mxu1 %v61_v22  ;;  %488 = vmatpush1.msra.mxu0 %v424_v42  ;;  %v37_v53 = vld [vmem:[%s1216_s0 + $0x30] sm:$0xff]  ;;  %v415_v54 = vld [vmem:[#allocation2 + $0x68] sm:$0xff]  ;;  %v414_v55 = vld [vmem:[#allocation2 + $0x60] sm:$0xff] }
  0x20   :  { %752 = vmatmul.mubr.msk.f32.gmra.mxu1 %vm90_vm1, %v966_v24  ;;  %263 = vmatprep.subr.mxu1 %v58_v25  ;;  %v413_v56 = vld [vmem:[#allocation2 + $0x58] sm:$0xff]  ;;  %v412_v57 = vld [vmem:[#allocation2 + $0x50] sm:$0xff]  ;;  %v411_v59 = vld [vmem:[#allocation2 + $0x48] sm:$0xff] }
  0x21   :  { %204 = vmatprep.mubr.f32.mxu1 %v867_v0  ;;  %264 = vmatpush1.msra.mxu1 %v57_v26  ;;  %v38_v58 = vld [vmem:[%s1216_s0 + $0x38] sm:$0xff]  ;;  %v410_v60 = vld [vmem:[#allocation2 + $0x40] sm:$0xff]  ;;  %v408_v62 = vld [vmem:[#allocation2 + $0x30] sm:$0xff] }
  0x22   :  { %265 = vmatprep.subr.mxu1 %v54_v27  ;;  %489 = vmatprep.subr.mxu0 %v423_v44  ;;  %v409_v61 = vld [vmem:[#allocation2 + $0x38] sm:$0xff]  ;;  %v407_v63 = vld [vmem:[#allocation2 + $0x28] sm:$0xff]  ;;  %v406_v1 = vld [vmem:[#allocation2 + $0x20] sm:$0xff] }
  0x23   :  { %266 = vmatpush1.msra.mxu1 %v53_v29  ;;  %490 = vmatpush1.msra.mxu0 %v422_v45  ;;  %v405_v2 = vld [vmem:[#allocation2 + $0x18] sm:$0xff]  ;;  %v404_v3 = vld [vmem:[#allocation2 + $0x10] sm:$0xff]  ;;  %v403_v4 = vld [vmem:[#allocation2 + $0x8] sm:$0xff] }
  0x24   :  { %753 = vmatmul.mubr.msk.f32.gmra.mxu1 %vm90_vm1, %v986_v31  ;;  %267 = vmatprep.subr.mxu1 %v50_v32  ;;  %v465_v5 = vld [vmem:[#allocation2 + $0x1f8] sm:$0xff]  ;;  %v464_v6 = vld [vmem:[#allocation2 + $0x1f0] sm:$0xff]  ;;  %v463_v7 = vld [vmem:[#allocation2 + $0x1e8] sm:$0xff] }
  0x25   :  { %210 = vmatprep.mubr.f32.mxu1 %v867_v0  ;;  %268 = vmatpush1.msra.mxu1 %v49_v33  ;;  %v462_v8 = vld [vmem:[#allocation2 + $0x1e0] sm:$0xff]  ;;  %v461_v9 = vld [vmem:[#allocation2 + $0x1d8] sm:$0xff]  ;;  %v460_v10 = vld [vmem:[#allocation2 + $0x1d0] sm:$0xff] }
  0x26   :  { %269 = vmatprep.subr.mxu1 %v46_v34  ;;  %491 = vmatprep.subr.mxu0 %v421_v46  ;;  %v459_v11 = vld [vmem:[#allocation2 + $0x1c8] sm:$0xff]  ;;  %v458_v12 = vld [vmem:[#allocation2 + $0x1c0] sm:$0xff]  ;;  %v457_v13 = vld [vmem:[#allocation2 + $0x1b8] sm:$0xff] }
  0x27   :  { %270 = vmatpush1.msra.mxu1 %v45_v36  ;;  %492 = vmatpush1.msra.mxu0 %v420_v47  ;;  %v456_v14 = vld [vmem:[#allocation2 + $0x1b0] sm:$0xff]  ;;  %v454_v16 = vld [vmem:[#allocation2 + $0x1a0] sm:$0xff]  ;;  %v453_v17 = vld [vmem:[#allocation2 + $0x198] sm:$0xff] }
  0x28   :  { %754 = vmatmul.mubr.msk.f32.gmra.mxu1 %vm90_vm1, %v34_v38  ;;  %271 = vmatprep.subr.mxu1 %v42_v39  ;;  %v452_v18 = vld [vmem:[#allocation2 + $0x190] sm:$0xff]  ;;  %v451_v19 = vld [vmem:[#allocation2 + $0x188] sm:$0xff]  ;;  %v450_v20 = vld [vmem:[#allocation2 + $0x180] sm:$0xff] }
  0x29   :  { %216 = vmatprep.mubr.f32.mxu1 %v867_v0  ;;  %272 = vmatpush1.msra.mxu1 %v41_v40  ;;  %v449_v21 = vld [vmem:[#allocation2 + $0x178] sm:$0xff]  ;;  %v448_v22 = vld [vmem:[#allocation2 + $0x170] sm:$0xff]  ;;  %v447_v23 = vld [vmem:[#allocation2 + $0x168] sm:$0xff] }
  0x2a   :  { %493 = vmatprep.subr.mxu0 %v419_v49  ;;  %v445_v25 = vld [vmem:[#allocation2 + $0x158] sm:$0xff]  ;;  %v444_v26 = vld [vmem:[#allocation2 + $0x150] sm:$0xff]  ;;  %v443_v27 = vld [vmem:[#allocation2 + $0x148] sm:$0xff] }
  0x2b   :  { %494 = vmatpush1.msra.mxu0 %v418_v50  ;;  %v442_v28 = vld [vmem:[#allocation2 + $0x140] sm:$0xff]  ;;  %v441_v29 = vld [vmem:[#allocation2 + $0x138] sm:$0xff]  ;;  %v440_v30 = vld [vmem:[#allocation2 + $0x130] sm:$0xff] }
  0x2c   :  { %755 = vmatmul.mubr.msk.f32.gmra.mxu1 %vm90_vm1, %v35_v43  ;;  %495 = vmatprep.subr.mxu0 %v417_v51  ;;  %v438_v32 = vld [vmem:[#allocation2 + $0x120] sm:$0xff]  ;;  %v437_v33 = vld [vmem:[#allocation2 + $0x118] sm:$0xff]  ;;  %v436_v34 = vld [vmem:[#allocation2 + $0x110] sm:$0xff] }
  0x2d   :  { %222 = vmatprep.mubr.f32.mxu1 %v867_v0  ;;  %496 = vmatpush1.msra.mxu0 %v416_v52  ;;  %v435_v35 = vld [vmem:[#allocation2 + $0x108] sm:$0xff]  ;;  %v434_v36 = vld [vmem:[#allocation2 + $0x100] sm:$0xff]  ;;  %v623_v37 = vld [vmem:[%s1219_s3 + $0x78] sm:$0xff] }
  0x2e   :  { %497 = vmatprep.subr.mxu0 %v415_v54  ;;  %794 = vmatprep.subr.mxu1 %v623_v37  ;;  %v621_v39 = vld [vmem:[%s1219_s3 + $0x68] sm:$0xff]  ;;  %v620_v40 = vld [vmem:[%s1219_s3 + $0x60] sm:$0xff]  ;;  %v619_v41 = vld [vmem:[%s1219_s3 + $0x58] sm:$0xff] }
  0x2f   :  { %498 = vmatpush1.msra.mxu0 %v414_v55  ;;  %v618_v42 = vld [vmem:[%s1219_s3 + $0x50] sm:$0xff]  ;;  %v616_v44 = vld [vmem:[%s1219_s3 + $0x40] sm:$0xff]  ;;  %v615_v45 = vld [vmem:[%s1219_s3 + $0x38] sm:$0xff] }
  0x30   :  { %756 = vmatmul.mubr.msk.f32.gmra.mxu1 %vm90_vm1, %v36_v48  ;;  %499 = vmatprep.subr.mxu0 %v413_v56  ;;  %v614_v46 = vld [vmem:[%s1219_s3 + $0x30] sm:$0xff]  ;;  %v70_v56 = vlaneseq }
  0x31   :  { %228 = vmatprep.mubr.f32.mxu1 %v867_v0  ;;  %500 = vmatpush1.msra.mxu0 %v412_v57 }
  0x32   :  { %501 = vmatprep.subr.mxu0 %v411_v59  ;;  %v1088_v59 = vshrl.u32 %v70_v56, 7 }
  0x33   :  { %502 = vmatpush1.msra.mxu0 %v410_v60 }
  0x34   :  { %757 = vmatmul.mubr.msk.f32.gmra.mxu1 %vm90_vm1, %v37_v53  ;;  %503 = vmatprep.subr.mxu0 %v409_v61 }
  0x35   :  { %234 = vmatprep.mubr.f32.mxu1 %v867_v0  ;;  %504 = vmatpush1.msra.mxu0 %v408_v62  ;;  %v76_v62 = vsub.s32 1, %v1088_v59 }
  0x36   :  { %505 = vmatprep.subr.mxu0 %v407_v63  ;;  %v80_v63 = vsub.s32 2, %v1088_v59 }
  0x37   :  { %506 = vmatpush1.msra.mxu0 %v406_v1  ;;  %v72_v1 = vsub.s32 0, %v1088_v59 }
  0x38   :  { %758 = vmatmul.mubr.msk.f32.gmra.mxu1 %vm90_vm1, %v38_v58  ;;  %507 = vmatprep.subr.mxu0 %v405_v2 }
  0x39   :  { %305 = vmatprep.mubr.f32.mxu1 %v867_v0  ;;  %508 = vmatpush1.msra.mxu0 %v404_v3  ;;  %v748_v3 = vld [vmem:[%s1217_s1 + $0xe0] ss:$8 sm:$0xf] }
  0x3a   :  { %509 = vmatprep.subr.mxu0 %v403_v4  ;;  %v84_v4 = vsub.s32 3, %v1088_v59 }
  0x3c   :  { %761 = vmatmul.mubr.msk.f32.vlgmr.msra.gmra.mxu1 %vm90_vm1, %v944_v15  ;;  %v455_v15 = vld [vmem:[#allocation2 + $0x1a8] sm:$0xff] }
  0x3d   :  { %311 = vmatprep.mubr.f32.mxu1 %v867_v0  ;;  %795 = vmatpush3.msra.mxu1 %v623_v37 }
  0x40   :  { %762 = vmatmul.mubr.msk.f32.gmra.mxu1 %vm90_vm1, %v966_v24  ;;  %v446_v24 = vld [vmem:[#allocation2 + $0x160] sm:$0xff] }
  0x41   :  { %317 = vmatprep.mubr.f32.mxu1 %v867_v0 }
  0x44   :  { %763 = vmatmul.mubr.msk.f32.gmra.mxu1 %vm90_vm1, %v986_v31  ;;  %v439_v31 = vld [vmem:[#allocation2 + $0x128] sm:$0xff] }
  0x45   :  { %323 = vmatprep.mubr.f32.mxu1 %v867_v0 }
  0x48   :  { %764 = vmatmul.mubr.msk.f32.gmra.mxu1 %vm90_vm1, %v34_v38  ;;  %v622_v38 = vld [vmem:[%s1219_s3 + $0x70] sm:$0xff] }
  0x49   :  { %329 = vmatprep.mubr.f32.mxu1 %v867_v0  ;;  %796 = vmatprep.subr.mxu1 %v622_v38 }
  0x4a   :  { %797 = vmatpush3.msra.mxu1 %v622_v38 }
  0x4b   :  { %798 = vmatprep.subr.mxu1 %v621_v39 }
  0x4c   :  { %765 = vmatmul.mubr.msk.f32.gmra.mxu1 %vm90_vm1, %v35_v43  ;;  %v617_v43 = vld [vmem:[%s1219_s3 + $0x48] sm:$0xff] }
  0x4d   :  { %335 = vmatprep.mubr.f32.mxu1 %v867_v0  ;;  %799 = vmatpush3.msra.mxu1 %v621_v39 }
  0x4e   :  { %800 = vmatprep.subr.mxu1 %v620_v40 }
  0x4f   :  { %801 = vmatpush3.msra.mxu1 %v620_v40 }
  0x50   :  { %766 = vmatmul.mubr.msk.f32.gmra.mxu1 %vm90_vm1, %v36_v48  ;;  %802 = vmatprep.subr.mxu1 %v619_v41 }
  0x51   :  { %341 = vmatprep.mubr.f32.mxu1 %v867_v0  ;;  %803 = vmatpush3.msra.mxu1 %v619_v41 }
  0x52   :  { %804 = vmatprep.subr.mxu1 %v618_v42 }
  0x53   :  { %805 = vmatpush3.msra.mxu1 %v618_v42 }
  0x54   :  { %767 = vmatmul.mubr.msk.f32.gmra.mxu1 %vm90_vm1, %v37_v53  ;;  %806 = vmatprep.subr.mxu1 %v617_v43 }
  0x55   :  { %347 = vmatprep.mubr.f32.mxu1 %v867_v0  ;;  %v402_v0 = vld [vmem:[#allocation2] sm:$0xff]  ;;  %807 = vmatpush3.msra.mxu1 %v617_v43 }
  0x56   :  { %510 = vmatpush1.msra.mxu0 %v402_v0  ;;  %808 = vmatprep.subr.mxu1 %v616_v44 }
  0x57   :  { %511 = vmatprep.subr.mxu0 %v465_v5  ;;  %809 = vmatpush3.msra.mxu1 %v616_v44  ;;  %v1107_v5 = vrot.slane %v748_v3, %v76_v62 }
  0x58   :  { %768 = vmatmul.mubr.msk.f32.gmra.mxu1 %vm90_vm1, %v38_v58  ;;  %512 = vmatpush2.msra.mxu0 %v464_v6  ;;  %v1109_v6 = vrot.slane %v748_v3, %v80_v63 }
  0x59   :  { %513 = vmatprep.subr.mxu0 %v463_v7  ;;  %810 = vmatprep.subr.mxu1 %v615_v45  ;;  %v1113_v7 = vrot.slane %v748_v3, %v72_v1 }
  0x5a   :  { %514 = vmatpush2.msra.mxu0 %v462_v8  ;;  %811 = vmatpush3.msra.mxu1 %v615_v45 }
  0x5b   :  { %515 = vmatprep.subr.mxu0 %v461_v9  ;;  %812 = vmatprep.subr.mxu1 %v614_v46  ;;  %v1117_v9 = vrot.slane %v748_v3, %v84_v4 }
  0x5c   :  { %516 = vmatpush2.msra.mxu0 %v460_v10  ;;  %813 = vmatpush3.msra.mxu1 %v614_v46 }
  0x5d   :  { %517 = vmatprep.subr.mxu0 %v459_v11 }
  0x5e   :  { %518 = vmatpush2.msra.mxu0 %v458_v12 }
  0x5f   :  { %519 = vmatprep.subr.mxu0 %v457_v13 }
  0x60   :  { %520 = vmatpush2.msra.mxu0 %v456_v14 }
  0x61   :  { %521 = vmatprep.subr.mxu0 %v455_v15 }
  0x62   :  { %522 = vmatpush2.msra.mxu0 %v454_v16 }
  0x63   :  { %523 = vmatprep.subr.mxu0 %v453_v17 }
  0x64   :  { %524 = vmatpush2.msra.mxu0 %v452_v18 }
  0x65   :  { %525 = vmatprep.subr.mxu0 %v451_v19 }
  0x66   :  { %526 = vmatpush2.msra.mxu0 %v450_v20 }
  0x67   :  { %527 = vmatprep.subr.mxu0 %v449_v21 }
  0x68   :  { %528 = vmatpush2.msra.mxu0 %v448_v22 }
  0x69   :  { %529 = vmatprep.subr.mxu0 %v447_v23 }
  0x6a   :  { %530 = vmatpush2.msra.mxu0 %v446_v24 }
  0x6b   :  { %531 = vmatprep.subr.mxu0 %v445_v25 }
  0x6c   :  { %532 = vmatpush2.msra.mxu0 %v444_v26 }
  0x6d   :  { %533 = vmatprep.subr.mxu0 %v443_v27 }
  0x6e   :  { %534 = vmatpush2.msra.mxu0 %v442_v28 }
  0x6f   :  { %535 = vmatprep.subr.mxu0 %v441_v29 }
  0x70   :  { %536 = vmatpush2.msra.mxu0 %v440_v30 }
  0x71   :  { %537 = vmatprep.subr.mxu0 %v439_v31 }
  0x72   :  { %538 = vmatpush2.msra.mxu0 %v438_v32 }
  0x73   :  { %539 = vmatprep.subr.mxu0 %v437_v33 }
  0x74   :  { %540 = vmatpush2.msra.mxu0 %v436_v34 }
  0x75   :  { %541 = vmatprep.subr.mxu0 %v435_v35 }
  0x76   :  { %542 = vmatpush2.msra.mxu0 %v434_v36 }
  0xdc   :  { %v194_v47 = vpop.f32.mrf.mxu1 }
  0xdd   :  { %v195_v13 = vadd.f32 %v194_v47, %v1113_v7 }
  0xde   :  { %v196_v48 = vpop.f32.mrf.mxu1 }
  0xdf   :  { %v197_v11 = vadd.f32 %v196_v48, %v1107_v5  ;;  %v354_v22 = vmax.f32 %v195_v13, 0.0 }
  0xe0   :  { %v200_v49 = vpop.f32.mrf.mxu1 }
  0xe1   :  { %v355_v18 = vmax.f32 %v197_v11, 0.0  ;;  %v201_v23 = vadd.f32 %v200_v49, %v1113_v7 }
  0xe2   :  { %v202_v50 = vpop.f32.mrf.mxu1 }
  0xe3   :  { %v203_v19 = vadd.f32 %v202_v50, %v1107_v5  ;;  %v358_v34 = vmax.f32 %v201_v23, 0.0 }
  0xe4   :  { %v206_v51 = vpop.f32.mrf.mxu1 }
  0xe5   :  { %v359_v30 = vmax.f32 %v203_v19, 0.0  ;;  %v207_v35 = vadd.f32 %v206_v51, %v1113_v7 }
  0xe6   :  { %v208_v52 = vpop.f32.mrf.mxu1 }
  0xe7   :  { %v209_v31 = vadd.f32 %v208_v52, %v1107_v5  ;;  %v362_v46 = vmax.f32 %v207_v35, 0.0 }
  0xe8   :  { %v212_v53 = vpop.f32.mrf.mxu1 }
  0xe9   :  { %v363_v42 = vmax.f32 %v209_v31, 0.0  ;;  %v213_v47 = vadd.f32 %v212_v53, %v1113_v7 }
  0xea   :  { %v214_v54 = vpop.f32.mrf.mxu1 }
  0xeb   :  { %v215_v43 = vadd.f32 %v214_v54, %v1107_v5 }
  0xec   :  { %v1082_v55 = vpop.f32.mrf.mxu1 }
  0xed   :  { %v367_v63 = vmax.f32 %v215_v43, 0.0  ;;  %v219_v53 = vadd.f32 %v1082_v55, %v1113_v7 }
  0xee   :  { %v1084_v57 = vpop.f32.mrf.mxu1 }
  0xef   :  { %v221_v3 = vadd.f32 %v1084_v57, %v1107_v5 }
  0xf0   :  { %v1086_v58 = vpop.f32.mrf.mxu1 }
  0xf1   :  { %v225_v55 = vadd.f32 %v1086_v58, %v1113_v7 }
  0xf2   :  { %v1090_v60 = vpop.f32.mrf.mxu1 }
  0xf3   :  { %v227_v57 = vadd.f32 %v1090_v60, %v1107_v5 }
  0xf4   :  { %v1092_v61 = vpop.f32.mrf.mxu1 }
  0xf5   :  { %v231_v58 = vadd.f32 %v1092_v61, %v1113_v7 }
  0xf6   :  { %v1097_v2 = vpop.f32.mrf.mxu1 }
  0xf7   :  { %v233_v60 = vadd.f32 %v1097_v2, %v1107_v5 }
  0xf8   :  { %v1103_v0 = vpop.f32.mrf.mxu1 }
  0xf9   :  { %v237_v61 = vadd.f32 %v1103_v0, %v1113_v7  ;;  %v613_v0 = vld [vmem:[%s1219_s3 + $0x28] sm:$0xff]  ;;  %v611_v7 = vld [vmem:[%s1219_s3 + $0x18] sm:$0xff] }
  0xfa   :  { %v1115_v8 = vpop.f32.mrf.mxu1  ;;  %814 = vmatprep.subr.mxu1 %v613_v0 }
  0xfb   :  { %v239_v2 = vadd.f32 %v1115_v8, %v1107_v5  ;;  %815 = vmatpush3.msra.mxu1 %v613_v0 }
  0xfc   :  { %v307_v10 = vpop.f32.mrf.mxu1 }
  0xfd   :  { %v308_v12 = vadd.f32 %v307_v10, %v1109_v6  ;;  %v366_v10 = vmax.f32 %v213_v47, 0.0 }
  0xfe   :  { %v309_v14 = vpop.f32.mrf.mxu1 }
  0xff   :  { %v310_v15 = vadd.f32 %v309_v14, %v1117_v9  ;;  %v356_v16 = vmax.f32 %v308_v12, 0.0 }
 0x100   :  { %v313_v17 = vpop.f32.mrf.mxu1 }
 0x101   :  { %v357_v20 = vmax.f32 %v310_v15, 0.0  ;;  %v314_v21 = vadd.f32 %v313_v17, %v1109_v6  ;;  %v386_v27 = vmax.f32 %v354_v22, %v356_v16  ;;  %v371_v17 = vmax.f32 %v221_v3, 0.0 }
 0x102   :  { %v315_v24 = vpop.f32.mrf.mxu1 }
 0x103   :  { %v316_v25 = vadd.f32 %v315_v24, %v1117_v9  ;;  %v387_v26 = vmax.f32 %v355_v18, %v357_v20  ;;  %v360_v28 = vmax.f32 %v314_v21, 0.0  ;;  %v370_v20 = vmax.f32 %v219_v53, 0.0 }
 0x104   :  { %v319_v29 = vpop.f32.mrf.mxu1 }
 0x105   :  { %v361_v32 = vmax.f32 %v316_v25, 0.0  ;;  %v320_v33 = vadd.f32 %v319_v29, %v1109_v6  ;;  %543 = vmatprep.mubr.f32.mxu0 %v387_v26  ;;  %v388_v39 = vmax.f32 %v358_v34, %v360_v28 }
 0x106   :  { %v321_v36 = vpop.f32.mrf.mxu1  ;;  %544 = vmatmul.mubr.f32.vlgmr.msra.gmra.mxu0 %v386_v27  ;;  %v375_v27 = vmax.f32 %v227_v57, 0.0 }
 0x107   :  { %v389_v37 = vmax.f32 %v359_v30, %v361_v32  ;;  %v322_v38 = vadd.f32 %v321_v36, %v1117_v9  ;;  %v364_v40 = vmax.f32 %v320_v33, 0.0  ;;  %v374_v30 = vmax.f32 %v225_v55, 0.0 }
 0x108   :  { %v325_v41 = vpop.f32.mrf.mxu1 }
 0x109   :  { %v365_v44 = vmax.f32 %v322_v38, 0.0  ;;  %v326_v45 = vadd.f32 %v325_v41, %v1109_v6  ;;  %549 = vmatprep.mubr.f32.mxu0 %v389_v37  ;;  %v390_v51 = vmax.f32 %v362_v46, %v364_v40  ;;  %v379_v37 = vmax.f32 %v233_v60, 0.0 }
 0x10a   :  { %v327_v48 = vpop.f32.mrf.mxu1  ;;  %550 = vmatmul.mubr.f32.gmra.mxu0 %v388_v39  ;;  %v378_v40 = vmax.f32 %v231_v58, 0.0  ;;  %v383_v46 = vmax.f32 %v239_v2, 0.0 }
 0x10b   :  { %v391_v49 = vmax.f32 %v363_v42, %v365_v44  ;;  %v328_v50 = vadd.f32 %v327_v48, %v1117_v9  ;;  %v368_v52 = vmax.f32 %v326_v45, 0.0  ;;  %v382_v48 = vmax.f32 %v237_v61, 0.0 }
 0x10c   :  { %v331_v56 = vpop.f32.mrf.mxu1 }
 0x10d   :  { %v369_v54 = vmax.f32 %v328_v50, 0.0  ;;  %v332_v4 = vadd.f32 %v331_v56, %v1109_v6  ;;  %555 = vmatprep.mubr.f32.mxu0 %v391_v49  ;;  %v392_v14 = vmax.f32 %v366_v10, %v368_v52  ;;  %v609_v49 = vld [vmem:[%s1219_s3 + $0x8] sm:$0xff]  ;;  %v608_v50 = vld [vmem:[%s1219_s3] sm:$0xff] }
 0x10e   :  { %v333_v11 = vpop.f32.mrf.mxu1  ;;  %556 = vmatmul.mubr.f32.gmra.mxu0 %v390_v51  ;;  %v467_v51 = vld [vmem:[#allocation2 + $0x200] ss:$8 sm:$0x3] }
 0x10f   :  { %v393_v12 = vmax.f32 %v367_v63, %v369_v54  ;;  %v334_v13 = vadd.f32 %v333_v11, %v1117_v9  ;;  %v372_v15 = vmax.f32 %v332_v4, 0.0  ;;  %v472_v52 = vrot.slane %v467_v51, %v72_v1 }
 0x110   :  { %v337_v16 = vpop.f32.mrf.mxu1  ;;  %v476_v56 = vrot.slane %v467_v51, %v76_v62 }
 0x111   :  { %v373_v18 = vmax.f32 %v334_v13, 0.0  ;;  %v338_v19 = vadd.f32 %v337_v16, %v1109_v6  ;;  %561 = vmatprep.mubr.f32.mxu0 %v393_v12  ;;  %v394_v24 = vmax.f32 %v370_v20, %v372_v15 }
 0x112   :  { %v339_v21 = vpop.f32.mrf.mxu1  ;;  %562 = vmatmul.mubr.f32.gmra.mxu0 %v392_v14 }
 0x113   :  { %v395_v22 = vmax.f32 %v371_v17, %v373_v18  ;;  %v340_v23 = vadd.f32 %v339_v21, %v1117_v9  ;;  %v376_v25 = vmax.f32 %v338_v19, 0.0 }
 0x114   :  { %v343_v26 = vpop.f32.mrf.mxu1 }
 0x115   :  { %v377_v28 = vmax.f32 %v340_v23, 0.0  ;;  %v344_v29 = vadd.f32 %v343_v26, %v1109_v6  ;;  %567 = vmatprep.mubr.f32.mxu0 %v395_v22  ;;  %v396_v34 = vmax.f32 %v374_v30, %v376_v25 }
 0x116   :  { %v345_v31 = vpop.f32.mrf.mxu1  ;;  %568 = vmatmul.mubr.f32.gmra.mxu0 %v394_v24 }
 0x117   :  { %v397_v32 = vmax.f32 %v375_v27, %v377_v28  ;;  %v346_v33 = vadd.f32 %v345_v31, %v1117_v9  ;;  %v380_v35 = vmax.f32 %v344_v29, 0.0 }
 0x118   :  { %v349_v36 = vpop.f32.mrf.mxu1 }
 0x119   :  { %v381_v38 = vmax.f32 %v346_v33, 0.0  ;;  %v350_v39 = vadd.f32 %v349_v36, %v1109_v6  ;;  %573 = vmatprep.mubr.f32.mxu0 %v397_v32  ;;  %v398_v44 = vmax.f32 %v378_v40, %v380_v35  ;;  %v612_v6 = vld [vmem:[%s1219_s3 + $0x20] sm:$0xff] }
 0x11a   :  { %v351_v41 = vpop.f32.mrf.mxu1  ;;  %574 = vmatmul.mubr.f32.gmra.mxu0 %v396_v34  ;;  %816 = vmatprep.subr.mxu1 %v612_v6 }
 0x11b   :  { %v399_v42 = vmax.f32 %v379_v37, %v381_v38  ;;  %v352_v43 = vadd.f32 %v351_v41, %v1117_v9  ;;  %v384_v45 = vmax.f32 %v350_v39, 0.0  ;;  %817 = vmatpush3.msra.mxu1 %v612_v6  ;;  %v610_v9 = vld [vmem:[%s1219_s3 + $0x10] sm:$0xff] }
 0x11c   :  { %818 = vmatprep.subr.mxu1 %v611_v7 }
 0x11d   :  { %v385_v47 = vmax.f32 %v352_v43, 0.0  ;;  %579 = vmatprep.mubr.f32.mxu0 %v399_v42  ;;  %v400_v8 = vmax.f32 %v382_v48, %v384_v45  ;;  %819 = vmatpush3.msra.mxu1 %v611_v7 }
 0x11e   :  { %580 = vmatmul.mubr.f32.gmra.mxu0 %v398_v44  ;;  %820 = vmatprep.subr.mxu1 %v610_v9  ;;  %v769_v44 = vld [vmem:[%s1219_s3 + $0x80] ss:$0 sm:$0xff] }
 0x11f   :  { %v401_v5 = vmax.f32 %v383_v46, %v385_v47  ;;  %821 = vmatpush3.msra.mxu1 %v610_v9 }
 0x120   :  { %822 = vmatprep.subr.mxu1 %v609_v49 }
 0x121   :  { %585 = vmatprep.mubr.f32.mxu0 %v401_v5  ;;  %823 = vmatpush3.msra.mxu1 %v609_v49 }
 0x122   :  { %586 = vmatmul.mubr.f32.gmra.mxu0 %v400_v8  ;;  %824 = vmatprep.subr.mxu1 %v608_v50 }
 0x123   :  { %825 = vmatpush3.msra.mxu1 %v608_v50 }
 0x1c6   :  { %v545_v63 = vpop.f32.mrf.mxu0 }
 0x1c7   :  { %v546_v54 = vadd.f32 %v545_v63, %v472_v52 }
 0x1c8   :  { %v547_v3 = vpop.f32.mrf.mxu0 }
 0x1c9   :  { %v548_v4 = vadd.f32 %v547_v3, %v476_v56 }
 0x1ca   :  { %v551_v10 = vpop.f32.mrf.mxu0 }
 0x1cb   :  { %v592_v53 = vmax.f32 %v546_v54, %v548_v4  ;;  %v552_v13 = vadd.f32 %v551_v10, %v472_v52 }
 0x1cc   :  { %v553_v11 = vpop.f32.mrf.mxu0 }
 0x1cd   :  { %v600_v12 = vmax.f32 %v592_v53, 0.0  ;;  %v554_v14 = vadd.f32 %v553_v11, %v476_v56 }
 0x1ce   :  { %v557_v15 = vpop.f32.mrf.mxu0 }
 0x1cf   :  { %v593_v16 = vmax.f32 %v552_v13, %v554_v14  ;;  %826 = vmatprep.mubr.f32.mxu1 %v600_v12  ;;  %v558_v18 = vadd.f32 %v557_v15, %v472_v52 }
 0x1d0   :  { %v559_v17 = vpop.f32.mrf.mxu0 }
 0x1d1   :  { %v601_v57 = vmax.f32 %v593_v16, 0.0  ;;  %v560_v1 = vadd.f32 %v559_v17, %v476_v56 }
 0x1d2   :  { %v563_v19 = vpop.f32.mrf.mxu0 }
 0x1d3   :  { %v594_v59 = vmax.f32 %v558_v18, %v560_v1  ;;  %827 = vmatmul.mubr.f32.vlgmr.msra.gmra.mxu1 %v601_v57  ;;  %v564_v55 = vadd.f32 %v563_v19, %v472_v52 }
 0x1d4   :  { %v565_v62 = vpop.f32.mrf.mxu0 }
 0x1d5   :  { %v602_v20 = vmax.f32 %v594_v59, 0.0  ;;  %v566_v21 = vadd.f32 %v565_v62, %v476_v56 }
 0x1d6   :  { %v569_v22 = vpop.f32.mrf.mxu0 }
 0x1d7   :  { %v595_v23 = vmax.f32 %v564_v55, %v566_v21  ;;  %829 = vmatprep.mubr.f32.mxu1 %v602_v20  ;;  %v570_v26 = vadd.f32 %v569_v22, %v472_v52 }
 0x1d8   :  { %v571_v24 = vpop.f32.mrf.mxu0 }
 0x1d9   :  { %v603_v25 = vmax.f32 %v595_v23, 0.0  ;;  %v572_v27 = vadd.f32 %v571_v24, %v476_v56 }
 0x1da   :  { %v575_v60 = vpop.f32.mrf.mxu0 }
 0x1db   :  { %v596_v28 = vmax.f32 %v570_v26, %v572_v27  ;;  %830 = vmatmul.mubr.f32.gmra.mxu1 %v603_v25  ;;  %v576_v58 = vadd.f32 %v575_v60, %v472_v52 }
 0x1dc   :  { %v577_v29 = vpop.f32.mrf.mxu0 }
 0x1dd   :  { %v604_v30 = vmax.f32 %v596_v28, 0.0  ;;  %v578_v31 = vadd.f32 %v577_v29, %v476_v56 }
 0x1de   :  { %v581_v32 = vpop.f32.mrf.mxu0 }
 0x1df   :  { %v597_v33 = vmax.f32 %v576_v58, %v578_v31  ;;  %832 = vmatprep.mubr.f32.mxu1 %v604_v30  ;;  %v582_v36 = vadd.f32 %v581_v32, %v472_v52 }
 0x1e0   :  { %v583_v34 = vpop.f32.mrf.mxu0 }
 0x1e1   :  { %v605_v35 = vmax.f32 %v597_v33, 0.0  ;;  %v584_v37 = vadd.f32 %v583_v34, %v476_v56 }
 0x1e2   :  { %v587_v2 = vpop.f32.mrf.mxu0 }
 0x1e3   :  { %v598_v38 = vmax.f32 %v582_v36, %v584_v37  ;;  %833 = vmatmul.mubr.f32.gmra.mxu1 %v605_v35  ;;  %v588_v61 = vadd.f32 %v587_v2, %v472_v52 }
 0x1e4   :  { %v589_v39 = vpop.f32.mrf.mxu0 }
 0x1e5   :  { %v606_v40 = vmax.f32 %v598_v38, 0.0  ;;  %v590_v41 = vadd.f32 %v589_v39, %v476_v56 }
 0x1e7   :  { %v599_v42 = vmax.f32 %v588_v61, %v590_v41  ;;  %835 = vmatprep.mubr.f32.mxu1 %v606_v40 }
 0x1e9   :  { %v607_v43 = vmax.f32 %v599_v42, 0.0 }
 0x1eb   :  { %836 = vmatmul.mubr.f32.gmra.mxu1 %v607_v43 }
 0x293   :  { %v828_v45 = vpop.f32.mrf.mxu1 }
 0x294   :  { %v701_v46 = vadd.f32 %v828_v45, %v769_v44 }
 0x295   :  { %v695_v47 = vpop.f32.mrf.mxu1 }
 0x296   :  { %736 = vst.msk [vmem:[%s1220_s4 + $0x8] sm:$0xff] %vm734_vm2, %v701_v46  ;;  %v696_v48 = vadd.f32 %v769_v44, %v695_v47 }
 0x298   :  { %735 = vst.msk [vmem:[%s1220_s4] sm:$0xff] %vm734_vm2, %v696_v48 }
 0x29b   :  { %v831_v5 = vpop.f32.mrf.mxu1 }
 0x29c   :  { %v711_v8 = vadd.f32 %v831_v5, %v769_v44 }
 0x29d   :  { %v705_v0 = vpop.f32.mrf.mxu1 }
 0x29e   :  { %738 = vst.msk [vmem:[%s1220_s4 + $0x18] sm:$0xff] %vm734_vm2, %v711_v8  ;;  %v706_v6 = vadd.f32 %v769_v44, %v705_v0 }
 0x2a0   :  { %737 = vst.msk [vmem:[%s1220_s4 + $0x10] sm:$0xff] %vm734_vm2, %v706_v6 }
 0x2a3   :  { %v834_v7 = vpop.f32.mrf.mxu1 }
 0x2a4   :  { %v721_v9 = vadd.f32 %v834_v7, %v769_v44 }
 0x2a5   :  { %v715_v49 = vpop.f32.mrf.mxu1 }
 0x2a6   :  { %740 = vst.msk [vmem:[%s1220_s4 + $0x28] sm:$0xff] %vm734_vm2, %v721_v9  ;;  %v716_v50 = vadd.f32 %v769_v44, %v715_v49 }
 0x2a8   :  { %739 = vst.msk [vmem:[%s1220_s4 + $0x20] sm:$0xff] %vm734_vm2, %v716_v50 }
 0x2ab   :  { %v837_v51 = vpop.f32.mrf.mxu1 }
 0x2ac   :  { %v731_v52 = vadd.f32 %v837_v51, %v769_v44 }
 0x2ad   :  { %v725_v56 = vpop.f32.mrf.mxu1 }
 0x2ae   :  { %742 = vst.msk [vmem:[%s1220_s4 + $0x38] sm:$0xff] %vm734_vm2, %v731_v52  ;;  %v726_v63 = vadd.f32 %v769_v44, %v725_v56 }
 0x2b0   :  { %741 = vst.msk [vmem:[%s1220_s4 + $0x30] sm:$0xff] %vm734_vm2, %v726_v63 }
 0x2b1   :  { %747 = vsyncpa [#allocation3], 1 }

</bundles_post_ra>
